<compile_context>
chip_gen: v7x
topology: tpu7x:2x2x1
jax: 0.10.0
libtpu: 0.0.40
codegen_flags: <defaults>
</compile_context>

<pallas_src>
import functools

import jax
import jax.numpy as jnp
from jax import lax
from jax.experimental import pallas as pl
from jax.experimental.pallas import tpu as pltpu


def _attention_head_kernel(*refs, inv_keep, mxu_dtype, has_dropout):
    # refs: x (B,T,C), w_fused (C,3H) [q|k|v], b_fused (1,3H), [keep_mask (B,T,T)], out (B,T,H)
    if has_dropout:
        x_ref, w_ref, b_ref, mask_ref, o_ref = refs
    else:
        x_ref, w_ref, b_ref, o_ref = refs
        mask_ref = None

    B, T, C = x_ref.shape
    H = o_ref.shape[-1]

    x = x_ref[...]
    w = w_ref[...]
    if mxu_dtype is not None:
        x = x.astype(mxu_dtype)
        w = w.astype(mxu_dtype)

    # Fused QKV projection: one (B*T, C) x (C, 3H) MXU matmul (scale pre-folded into w/b).
    proj = jnp.einsum('btc,cd->btd', x, w,
                      preferred_element_type=jnp.float32) + b_ref[...]      # (B, T, 3H)

    q = proj[..., 0:H]            # already scaled by 1/sqrt(C) via packed weights
    k = proj[..., H:2 * H]
    v = proj[..., 2 * H:3 * H]

    if mxu_dtype is not None:
        q = q.astype(mxu_dtype)
        k = k.astype(mxu_dtype)
        v = v.astype(mxu_dtype)

    # Attention scores q @ k^T, batched over B (contraction on head dim).
    s = jnp.einsum('bqd,bkd->bqk', q, k,
                   preferred_element_type=jnp.float32)                       # (B, T, T)

    # Causal mask from 2D iotas, broadcast over batch.
    row = lax.broadcasted_iota(jnp.int32, (T, T), 0)
    col = lax.broadcasted_iota(jnp.int32, (T, T), 1)
    s = jnp.where((row >= col)[None, :, :], s, -jnp.inf)

    # Unnormalized softmax; normalization deferred to the (T, H) output tile.
    m = jnp.max(s, axis=-1, keepdims=True)
    e = jnp.exp(s - m)
    l = jnp.sum(e, axis=-1, keepdims=True)                                   # (B, T, 1)

    if has_dropout:
        # Zero dropped (unnormalized) weights; dividing by the pre-dropout sum l and
        # rescaling by 1/(1-p) below is mathematically identical to dropout(softmax).
        e = e * mask_ref[...]

    p = e.astype(mxu_dtype) if mxu_dtype is not None else e
    pv = jnp.einsum('bqk,bkd->bqd', p, v,
                    preferred_element_type=jnp.float32)                      # (B, T, H)

    # Fold softmax 1/l and dropout 1/(1-p) into ONE O(T*H) multiply (EUP reciprocal).
    r = pl.reciprocal(l, approx=False)
    if inv_keep != 1.0:
        r = r * inv_keep
    o_ref[...] = (pv * r).astype(o_ref.dtype)


def pack_params(wk, wq, wv, bk, bq, bv, n_embed):
    """One-time packing (hoisted out of the forward path).

    wk/wq/wv: (H, C) PyTorch-layout Linear weights; bk/bq/bv: (H,).
    Returns (w_fused (C, 3H), b_fused (1, 3H)) with the 1/sqrt(n_embed) score scale
    folded into the q columns (the PyTorch module scales by n_embed, not head_size).
    """
    scale = float(n_embed) ** -0.5
    w_fused = jnp.concatenate([wq.T * scale, wk.T, wv.T], axis=1)            # (C, 3H)
    b_fused = jnp.concatenate([bq * scale, bk, bv]).reshape(1, -1)           # (1, 3H)
    return w_fused, b_fused


def attention_head_dropout(x, w_fused, b_fused, *, dropout_p=0.0, rng_key=None,
                           mxu_dtype=None):
    """x: (B, T, C). w_fused: (C, 3H), b_fused: (1, 3H) from pack_params.
    dropout_p > 0 requires rng_key (train mode).  mxu_dtype: optional bf16 for v6e/v7x."""
    B, T, C = x.shape
    H = w_fused.shape[1] // 3
    has_dropout = float(dropout_p) > 0.0
    inv_keep = 1.0 / (1.0 - float(dropout_p)) if has_dropout else 1.0

    inputs = [x, w_fused, b_fused]
    in_specs = [
        pl.BlockSpec((B, T, C), lambda i: (0, 0, 0)),
        pl.BlockSpec((C, 3 * H), lambda i: (0, 0)),
        pl.BlockSpec((1, 3 * H), lambda i: (0, 0)),
    ]
    if has_dropout:
        if rng_key is None:
            raise ValueError("dropout_p > 0 requires rng_key")
        # TODO(synk): RNG stream cannot bit-match torch.nn.Dropout; semantics
        # (Bernoulli keep + 1/(1-p) rescale on the attention weights) match.
        keep = (jax.random.uniform(rng_key, (B, T, T), dtype=jnp.float32)
                >= jnp.float32(dropout_p)).astype(jnp.float32)
        inputs.append(keep)
        in_specs.append(pl.BlockSpec((B, T, T), lambda i: (0, 0, 0)))

    kernel = functools.partial(_attention_head_kernel, inv_keep=inv_keep,
                               mxu_dtype=mxu_dtype, has_dropout=has_dropout)

    flops = 2 * B * T * C * 3 * H + 2 * 2 * B * T * T * H
    bytes_accessed = (x.size + w_fused.size + b_fused.size + B * T * H) * 4 \
        + (B * T * T * 4 if has_dropout else 0)
    cost = pl.CostEstimate(flops=flops, transcendentals=B * T * T,
                           bytes_accessed=bytes_accessed)

    # Single grid step: at these shapes per-step pipeline overhead dominates, so no
    # batch tiling.  (Real per-TC sharding on v7x would need core_map / CORE_PARALLEL.)
    return pl.pallas_call(
        kernel,
        out_shape=jax.ShapeDtypeStruct((B, T, H), x.dtype),
        grid=(1,),
        in_specs=in_specs,
        out_specs=pl.BlockSpec((B, T, H), lambda i: (0, 0, 0)),
        compiler_params=pltpu.CompilerParams(dimension_semantics=("arbitrary",)),
        cost_estimate=cost,
    )(*inputs)


def _reference(x, wk, wq, wv, bk, bq, bv):
    B, T, C = x.shape
    k = x @ wk.T + bk
    q = x @ wq.T + bq
    v = x @ wv.T + bv
    wei = (q @ jnp.swapaxes(k, -2, -1)) * (C ** -0.5)
    tril = jnp.tril(jnp.ones((T, T), dtype=x.dtype))
    wei = jnp.where(tril == 0, -jnp.inf, wei)
    wei = jax.nn.softmax(wei, axis=-1)
    return wei @ v


if __name__ == "__main__":
    # cfg: n_embed=32, block_size=8, head_size=16, bias=True
    B, T, C, H = 2, 8, 32, 16
    key = jax.random.PRNGKey(0)
    kx, kk, kq, kv, kbk, kbq, kbv, kdrop = jax.random.split(key, 8)

    x = jax.random.normal(kx, (B, T, C), dtype=jnp.float32)
    wk = jax.random.normal(kk, (H, C), dtype=jnp.float32) * 0.1
    wq = jax.random.normal(kq, (H, C), dtype=jnp.float32) * 0.1
    wv = jax.random.normal(kv, (H, C), dtype=jnp.float32) * 0.1
    bk = jax.random.normal(kbk, (H,), dtype=jnp.float32) * 0.1
    bq = jax.random.normal(kbq, (H,), dtype=jnp.float32) * 0.1
    bv = jax.random.normal(kbv, (H,), dtype=jnp.float32) * 0.1

    # One-time parameter packing (hoisted out of the forward path).
    w_fused, b_fused = pack_params(wk, wq, wv, bk, bq, bv, n_embed=C)
    w_fused = jax.block_until_ready(w_fused)
    b_fused = jax.block_until_ready(b_fused)

    # Eval-equivalent (dropout=0.0): check against pure-JAX reference.
    out = attention_head_dropout(x, w_fused, b_fused, dropout_p=0.0)
    out = jax.block_until_ready(out)
    ref = _reference(x, wk, wq, wv, bk, bq, bv)
    assert out.shape == (B, T, H)
    assert jnp.allclose(out, ref, atol=1e-3, rtol=1e-3), "mismatch vs reference"

    # Train-mode path (dropout active): exercise mask input + rescale codegen.
    out_do = attention_head_dropout(x, w_fused, b_fused,
                                    dropout_p=0.5, rng_key=kdrop)
    out_do = jax.block_until_ready(out_do)
    assert out_do.shape == (B, T, H)
    assert bool(jnp.all(jnp.isfinite(out_do)))

    print("KERNEL_OK")
</pallas_src>

<mosaic_0001>
module attributes {stable_mosaic.version = 11 : i64} {
  func.func @_attention_head_kernel(%arg0: i32, %arg1: memref<2x8x32xf32, #tpu.memory_space<vmem>>, %arg2: memref<32x48xf32, #tpu.memory_space<vmem>>, %arg3: memref<1x48xf32, #tpu.memory_space<vmem>>, %arg4: memref<2x8x16xf32, #tpu.memory_space<vmem>>) attributes {dimension_semantics = [#tpu.dimension_semantics<arbitrary>], iteration_bounds = array<i64: 1>, scalar_prefetch = 0 : i64, scratch_operands = 0 : i64, tpu.core_type = #tpu.core_type<tc>, window_params = [{pipeline_mode = #tpu.pipeline_mode<synchronous>, transform_indices = @transform_0, window_bounds = array<i64: 2, 8, 32>}, {pipeline_mode = #tpu.pipeline_mode<synchronous>, transform_indices = @transform_1, window_bounds = array<i64: 32, 48>}, {pipeline_mode = #tpu.pipeline_mode<synchronous>, transform_indices = @transform_2, window_bounds = array<i64: 1, 48>}, {pipeline_mode = #tpu.pipeline_mode<synchronous>, transform_indices = @transform_3, window_bounds = array<i64: 2, 8, 16>}]} {
    %c0 = arith.constant 0 : index
    %c0_0 = arith.constant 0 : index
    %c0_1 = arith.constant 0 : index
    %0 = vector.load %arg1[%c0, %c0_0, %c0_1] : memref<2x8x32xf32, #tpu.memory_space<vmem>>, vector<2x8x32xf32>
    %c0_2 = arith.constant 0 : index
    %c0_3 = arith.constant 0 : index
    %1 = vector.load %arg2[%c0_2, %c0_3] : memref<32x48xf32, #tpu.memory_space<vmem>>, vector<32x48xf32>
    "tpu.trace_start"() <{level = 10 : i32, message = "btc,cd->btd"}> : () -> ()
    %cst = arith.constant dense<0.000000e+00> : vector<2x8x48xf32>
    %2 = tpu.matmul %0, %1, %cst {dimension_numbers = #tpu.dot_dimension_numbers<[2], [0], [0, 1], [1], [0, 0, 0, 1, 1, 1], [], []>} : vector<2x8x32xf32>, vector<32x48xf32>, vector<2x8x48xf32> -> vector<2x8x48xf32>
    "tpu.trace_stop"() : () -> ()
    %c0_4 = arith.constant 0 : index
    %c0_5 = arith.constant 0 : index
    %3 = vector.load %arg3[%c0_4, %c0_5] : memref<1x48xf32, #tpu.memory_space<vmem>>, vector<1x48xf32>
    %4 = vector.shape_cast %3 : vector<1x48xf32> to vector<1x1x48xf32>
    %5 = vector.broadcast %4 : vector<1x1x48xf32> to vector<2x8x48xf32>
    %6 = arith.addf %2, %5 : vector<2x8x48xf32>
    %7 = vector.extract_strided_slice %6 {offsets = [0, 0, 0], sizes = [2, 8, 16], strides = [1, 1, 1]} : vector<2x8x48xf32> to vector<2x8x16xf32>
    %8 = vector.extract_strided_slice %6 {offsets = [0, 0, 16], sizes = [2, 8, 16], strides = [1, 1, 1]} : vector<2x8x48xf32> to vector<2x8x16xf32>
    %9 = vector.extract_strided_slice %6 {offsets = [0, 0, 32], sizes = [2, 8, 16], strides = [1, 1, 1]} : vector<2x8x48xf32> to vector<2x8x16xf32>
    "tpu.trace_start"() <{level = 10 : i32, message = "bqd,bkd->bqk"}> : () -> ()
    %cst_6 = arith.constant dense<0.000000e+00> : vector<2x8x8xf32>
    %10 = tpu.matmul %7, %8, %cst_6 {dimension_numbers = #tpu.dot_dimension_numbers<[2], [2], [1], [1], [0, 0, 0, 1, 1, 1], [0], [0]>} : vector<2x8x16xf32>, vector<2x8x16xf32>, vector<2x8x8xf32> -> vector<2x8x8xf32>
    "tpu.trace_stop"() : () -> ()
    %11 = tpu.iota {dimensions = array<i32: 0>} : vector<8x8xi32>
    %12 = tpu.iota {dimensions = array<i32: 1>} : vector<8x8xi32>
    %13 = arith.cmpi sge, %11, %12 : vector<8x8xi32>
    %14 = vector.shape_cast %13 : vector<8x8xi1> to vector<1x8x8xi1>
    %cst_7 = arith.constant 0xFF800000 : f32
    %15 = vector.shape_cast %14 : vector<1x8x8xi1> to vector<1x8x8xi1>
    %16 = vector.broadcast %15 : vector<1x8x8xi1> to vector<2x8x8xi1>
    %17 = vector.broadcast %cst_7 : f32 to vector<2x8x8xf32>
    %18 = arith.select %16, %10, %17 : vector<2x8x8xi1>, vector<2x8x8xf32>
    %cst_8 = arith.constant dense<0xFF800000> : vector<2x8xf32>
    %19 = vector.multi_reduction <maximumf>, %18, %cst_8 [2] : vector<2x8x8xf32> to vector<2x8xf32>
    %20 = vector.shape_cast %19 : vector<2x8xf32> to vector<2x8x1xf32>
    %21 = vector.broadcast %20 : vector<2x8x1xf32> to vector<2x8x8xf32>
    %22 = arith.subf %18, %21 : vector<2x8x8xf32>
    %23 = math.exp %22 : vector<2x8x8xf32>
    %cst_9 = arith.constant dense<0.000000e+00> : vector<2x8xf32>
    %24 = vector.multi_reduction <add>, %23, %cst_9 [2] : vector<2x8x8xf32> to vector<2x8xf32>
    %25 = vector.shape_cast %24 : vector<2x8xf32> to vector<2x8x1xf32>
    "tpu.trace_start"() <{level = 10 : i32, message = "bqk,bkd->bqd"}> : () -> ()
    %cst_10 = arith.constant dense<0.000000e+00> : vector<2x8x16xf32>
    %26 = tpu.matmul %23, %9, %cst_10 {dimension_numbers = #tpu.dot_dimension_numbers<[2], [1], [1], [2], [0, 0, 0, 1, 1, 2], [0], [0]>} : vector<2x8x8xf32>, vector<2x8x16xf32>, vector<2x8x16xf32> -> vector<2x8x16xf32>
    "tpu.trace_stop"() : () -> ()
    %27 = tpu.reciprocal %25 : vector<2x8x1xf32> -> vector<2x8x1xf32>
    %28 = vector.broadcast %27 : vector<2x8x1xf32> to vector<2x8x16xf32>
    %29 = arith.mulf %26, %28 : vector<2x8x16xf32>
    %c0_11 = arith.constant 0 : index
    %c0_12 = arith.constant 0 : index
    %c0_13 = arith.constant 0 : index
    %30 = vector.load %arg4[%c0_11, %c0_12, %c0_13] : memref<2x8x16xf32, #tpu.memory_space<vmem>>, vector<2x8x16xf32>
    tpu.vector_store %arg4[%c0_11, %c0_12, %c0_13], %29 {strides = array<i32>} : memref<2x8x16xf32, #tpu.memory_space<vmem>>, vector<2x8x16xf32>,
    return
  }
  func.func @transform_0(%arg0: i32) -> (i32, i32, i32) {
    %c0_i32 = arith.constant 0 : i32
    %c0_i32_0 = arith.constant 0 : i32
    %c0_i32_1 = arith.constant 0 : i32
    %c0_i32_2 = arith.constant 0 : i32
    return %c0_i32, %c0_i32_0, %c0_i32_1 : i32, i32, i32
  }
  func.func @transform_1(%arg0: i32) -> (i32, i32) {
    %c0_i32 = arith.constant 0 : i32
    %c0_i32_0 = arith.constant 0 : i32
    %c0_i32_1 = arith.constant 0 : i32
    return %c0_i32, %c0_i32_0 : i32, i32
  }
  func.func @transform_2(%arg0: i32) -> (i32, i32) {
    %c0_i32 = arith.constant 0 : i32
    %c0_i32_0 = arith.constant 0 : i32
    %c0_i32_1 = arith.constant 0 : i32
    return %c0_i32, %c0_i32_0 : i32, i32
  }
  func.func @transform_3(%arg0: i32) -> (i32, i32, i32) {
    %c0_i32 = arith.constant 0 : i32
    %c0_i32_0 = arith.constant 0 : i32
    %c0_i32_1 = arith.constant 0 : i32
    %c0_i32_2 = arith.constant 0 : i32
    return %c0_i32, %c0_i32_0, %c0_i32_1 : i32, i32, i32
  }
}

</mosaic_0001>

<bundles_post_ra>
// kernel: tpu_custom_call.1
= control target key start
LH: loop header
LB: loop body
LE: loop exit
PB: predicated region body
PF: predicated region fallthrough
CT: control target
= control target key end

     0   :  { %8 = vsyncpa [#allocation3], 0  ;;  %s741_s0 = inlined_call_operand.hbm [shape: f32[2,8,32], index: 0, kind: input, shape index: {}]   ;;  %s742_s1 = inlined_call_operand.hbm [shape: f32[32,48], index: 1, kind: input, shape index: {}]   ;;  %s743_s2 = inlined_call_operand.vmem [shape: f32[1,48], index: 2, kind: input, shape index: {}]   ;;  %s744_s3 = inlined_call_operand.hbm [shape: f32[2,8,16], index: 3, kind: output, shape index: {}]  }
   0x1   :  { %9 = vsyncpa [#allocation6], 0 }
   0x2   :  { %10 = vsyncpa [#allocation4], 0  ;;  %s648_s12 = smov [#allocation2]   ;;  %s576_s16 = scalar_lea.hbm %s741_s0, 256 }
   0x3   :  { %s16_s13 = sshll.u32 %s648_s12, 4  ;;  %p577_p0 = scmp.ne.s32.totalorder %s741_s0, %s576_s16  ;;  %s17_s13 = int_to_ptr.vmem [resolvable:$true] %s16_s13 }
   0x4   :  { %p580_p1 = scmp.lt.u32.totalorder %s576_s16, %s741_s0 }
   0x6   :  { %p582_p2 = pnand %p580_p1, %p577_p0 }
   0x8   :  { %585 = shalt.err (!%p582_p2)
}
   0x9   :  { %s586_s21 = scalar_lea.vmem %s17_s13, 256  ;;  %p591_p4 = scmp.lt.s32.totalorder %s17_s13, %s17_s13 }
   0xa   :  { %p587_p3 = scmp.ne.s32.totalorder %s17_s13, %s586_s21  ;;  %p592_p5 = scmp.lt.s32.totalorder %s586_s21, %s586_s21 }
   0xc   :  { %p593_p6 = por %p592_p5, %p591_p4 }
   0xe   :  { %p594_p7 = pnand %p593_p6, %p587_p3 }
  0x10   :  { %597 = shalt.err (!%p594_p7)
}
  0x11   :  { %s649_s22 = smov 128   ;;  %s650_s23 = smov 8  }
  0x12   :  { %22 = dma.hbm_to_vmem [thread:$0]  %s741_s0, 256, %s17_s13, [#allocation3], %s649_s22, %s649_s22, %s650_s23  }
  0x13   :  { %s651_s26 = smov [#allocation5]   ;;  %s598_s30 = scalar_lea.hbm %s742_s1, 512 }
  0x14   :  { %s28_s27 = sshll.u32 %s651_s26, 4  ;;  %p599_p8 = scmp.ne.s32.totalorder %s742_s1, %s598_s30  ;;  %s29_s27 = int_to_ptr.vmem [resolvable:$true] %s28_s27 }
  0x15   :  { %p602_p9 = scmp.lt.u32.totalorder %s598_s30, %s742_s1 }
  0x17   :  { %p604_p10 = pnand %p602_p9, %p599_p8 }
  0x19   :  { %607 = shalt.err (!%p604_p10)
}
  0x1a   :  { %s608_s8 = scalar_lea.vmem %s29_s27, 512  ;;  %p613_p12 = scmp.lt.s32.totalorder %s29_s27, %s29_s27 }
  0x1b   :  { %p609_p11 = scmp.ne.s32.totalorder %s29_s27, %s608_s8  ;;  %p614_p13 = scmp.lt.s32.totalorder %s608_s8, %s608_s8 }
  0x1d   :  { %p615_p0 = por %p614_p13, %p613_p12 }
  0x1f   :  { %p616_p1 = pnand %p615_p0, %p609_p11 }
  0x21   :  { %619 = shalt.err (!%p616_p1)
}
  0x22   :  { %34 = dma.hbm_to_vmem [thread:$0]  %s742_s1, 512, %s29_s27, [#allocation6], %s649_s22, %s649_s22, %s650_s23  }
  0x23   :  { %642 = dma.done.wait [#allocation3], 256  }
  0x24   :  { %643 = vsyncadd [#allocation3], 4294967040 }
  0x25   :  { %644 = dma.done.wait [#allocation6], 512  }
  0x26   :  { %645 = vsyncadd [#allocation6], 4294966784  ;;  %vm56_vm0 = vcmask 261120   ;;  %v45_v0 = vld [vmem:[#allocation5] sm:$0xff]  ;;  %v46_v1 = vld [vmem:[#allocation5 + $0x8] sm:$0xff]  ;;  %v652_v8 = vmov 0.0   ;;  %v293_v17 = vlaneseq }
  0x27   :  { %v47_v2 = vld [vmem:[#allocation5 + $0x10] sm:$0xff]  ;;  %v551_v3 = vpack.c.bf16 %v46_v1, %v45_v0  ;;  %v48_v4 = vld [vmem:[#allocation5 + $0x18] sm:$0xff]  ;;  %531 = vmatprep.subr.mxu1 %v652_v8  ;;  %vm653_vm1 = vmmov 0   ;;  %s654_s11 = smov 112   ;;  %s655_s12 = smov 96   ;;  %vm141_vm2 = vcmask 130048  }
  0x28   :  { %v43_v5 = vld [vmem:[#allocation2] sm:$0xff]  ;;  %v555_v6 = vpack.c.bf16 %v48_v4, %v47_v2  ;;  %v44_v7 = vld [vmem:[#allocation2 + $0x8] sm:$0xff]  ;;  %533 = vmatprep.mubr.msk.f32.mxu1 %vm653_vm1, %v652_v8  ;;  %v294_v18 = vshrl.u32 %v293_v17, 7  ;;  %v296_v19 = vand.u32 127, %v293_v17  ;;  %vm302_vm4 = vcmask 64512  }
  0x29   :  { %528 = vmatprep.mubr.msk.f32.mxu0 %vm56_vm0, %v43_v5  ;;  %552 = vmatprep.subr.bf16.mxu0 %v551_v3  ;;  %v497_v9 = vld [vmem:[%s743_s2] ss:$0 sm:$0xff]  ;;  %s656_s2 = smov [#allocation7]  }
  0x2a   :  { %554 = vmatpush3.bf16.msra.mxu0 %v551_v3  ;;  %vm297_vm3 = vcmp.ge.s32.totalorder %v294_v18, %v296_v19  ;;  %s484_s13 = sshll.u32 %s656_s2, 4  ;;  %s485_s13 = int_to_ptr.vmem [resolvable:$true] %s484_s13 }
  0x2b   :  { %556 = vmatprep.subr.bf16.mxu0 %v555_v6  ;;  %s620_s14 = scalar_lea.vmem %s485_s13, 256  ;;  %p625_p3 = scmp.lt.s32.totalorder %s485_s13, %s485_s13 }
  0x2c   :  { %p621_p2 = scmp.ne.s32.totalorder %s485_s13, %s620_s14  ;;  %p626_p4 = scmp.lt.s32.totalorder %s620_s14, %s620_s14 }
  0x2e   :  { %558 = vmatpush3.bf16.msra.mxu0 %v555_v6  ;;  %p627_p5 = por %p626_p4, %p625_p3 }
  0x2f   :  { %541 = vmatprep.subr.mxu0 %v652_v8 }
  0x30   :  { %p628_p6 = pnand %p627_p5, %p621_p2 }
  0x31   :  { %529 = vmatmul.mubr.msk.f32.vlgmr.msra.gmra.mrb[0].mxu0 %vm56_vm0, %v44_v7 }
  0x32   :  { %543 = vmatprep.mubr.msk.f32.mxu0 %vm653_vm1, %v652_v8 }
 0x104   :  { %v530_v10 = vpop.f32.mrb[0].mxu0 }
 0x105   :  { %v129_v11 = vpop.f32.mrb[1].mxu0  ;;  %v135_v13 = vadd.f32 %v530_v10, %v497_v9 }
 0x106   :  { %v130_v12 = vadd.f32 %v497_v9, %v129_v11 }
 0x108   :  { %139 = vrot.lane.b32.xlu0 %v130_v12, %s654_s11 }
 0x10c   :  { %217 = vrot.lane.b32.xlu0 %v135_v13, %s654_s11 }
 0x110   :  { %321 = vrot.lane.b32.xlu0 %v130_v12, %s655_s12 }
 0x17a   :  { %v140_v14 = vpop.permute.xlu0 %139 }
 0x17b   :  { %532 = vmatpush3.xpose.msk.msra.mxu1 %vm141_vm2, %v140_v14 }
 0x17c   :  { %536 = vmatprep.subr.mxu1 %v652_v8 }
 0x17e   :  { %534 = vmatmul.mubr.msk.f32.vlgmr.msra.gmra.mrb[0].mxu1 %vm141_vm2, %v130_v12  ;;  %v218_v15 = vpop.permute.xlu0 %217 }
 0x17f   :  { %537 = vmatpush3.xpose.msk.msra.mxu1 %vm141_vm2, %v218_v15  ;;  %538 = vmatprep.mubr.msk.f32.mxu1 %vm653_vm1, %v652_v8 }
 0x180   :  { %546 = vmatprep.subr.mxu1 %v652_v8 }
 0x182   :  { %539 = vmatmul.mubr.msk.f32.vlgmr.msra.gmra.mrb[2].mxu1 %vm141_vm2, %v135_v13  ;;  %v322_v16 = vpop.permute.xlu0 %321 }
 0x183   :  { %542 = vmatpush3.msra.mxu0 %v322_v16  ;;  %548 = vmatprep.mubr.msk.f32.mxu1 %vm653_vm1, %v652_v8 }
 0x251   :  { %v212_v20 = vpop.f32.mrb[0].mxu1 }
 0x252   :  { %v300_v21 = vsel %vm297_vm3, %v212_v20, -inf  ;;  %v535_v22 = vpop.f32.mrb[1].mxu1 }
 0x253   :  { %v303_v23 = vsel %vm302_vm4, %v300_v21, -inf }
 0x254   :  { %304 = vmax.xlane.f32.xlu1 %v303_v23 }
 0x255   :  { %v289_v24 = vpop.f32.mrb[2].mxu1 }
 0x256   :  { %v301_v25 = vsel %vm297_vm3, %v289_v24, -inf  ;;  %v540_v26 = vpop.f32.mrb[3].mxu1 }
 0x257   :  { %v306_v27 = vsel %vm302_vm4, %v301_v25, -inf }
 0x258   :  { %307 = vmax.xlane.f32.xlu1 %v306_v27 }
 0x269   :  { %397 = vrot.lane.b32.xlu1 %v135_v13, %s655_s12 }
 0x2e1   :  { %v305_v28 = vpop.xlane.xlu1 %304 }
 0x2e2   :  { %v309_v29 = vsub.f32 %v300_v21, %v305_v28 }
 0x2e4   :  { %v311_v30 = vmul.f32 1.442695, %v309_v29 }
 0x2e5   :  { %v308_v31 = vpop.xlane.xlu1 %307 }
 0x2e6   :  { %568 = vpow2.f32 %v311_v30  ;;  %v310_v32 = vsub.f32 %v301_v25, %v308_v31 }
 0x2e8   :  { %v313_v33 = vmul.f32 1.442695, %v310_v32 }
 0x2e9   :  { %v398_v34 = vpop.permute.xlu1 %397 }
 0x2ea   :  { %570 = vpow2.f32 %v313_v33  ;;  %547 = vmatpush3.msra.mxu1 %v398_v34 }
 0x2f0   :  { %v569_v35 = vpop.eup %568 }
 0x2f1   :  { %544 = vmatmul.mubr.msk.f32.vlgmr.msra.gmra.mrb[2].mxu0 %vm302_vm4, %v569_v35  ;;  %v315_v36 = vsel %vm302_vm4, %v569_v35, 0.0 }
 0x2f2   :  { %316 = vadd.xlane.f32.xlu0 %v315_v36 }
 0x2f4   :  { %v571_v37 = vpop.eup %570 }
 0x2f5   :  { %549 = vmatmul.mubr.msk.f32.vlgmr.msra.gmra.mrb[4].mxu1 %vm302_vm4, %v571_v37  ;;  %v318_v38 = vsel %vm302_vm4, %v571_v37, 0.0 }
 0x2f6   :  { %319 = vadd.xlane.f32.xlu1 %v318_v38 }
 0x37f   :  { %v317_v39 = vpop.xlane.xlu0 %316 }
 0x380   :  { %572 = vrcp.f32 %v317_v39 }
 0x383   :  { %v320_v40 = vpop.xlane.xlu1 %319 }
 0x384   :  { %574 = vrcp.f32 %v320_v40 }
 0x38a   :  { %v573_v41 = vpop.eup %572 }
 0x38e   :  { %v575_v45 = vpop.eup %574 }
 0x3c4   :  { %v393_v42 = vpop.f32.mrb[2].mxu0 }
 0x3c5   :  { %v475_v43 = vmul.f32 %v573_v41, %v393_v42  ;;  %v545_v44 = vpop.f32.mrb[3].mxu0 }
 0x3c7   :  { %477 = vst.msk [vmem:[#allocation7] sm:$0xff] %vm141_vm2, %v475_v43 }
 0x3c8   :  { %v469_v46 = vpop.f32.mrb[4].mxu1 }
 0x3c9   :  { %v476_v47 = vmul.f32 %v575_v45, %v469_v46  ;;  %v550_v48 = vpop.f32.mrb[5].mxu1 }
 0x3cb   :  { %478 = vst.msk [vmem:[#allocation7 + $0x8] sm:$0xff] %vm141_vm2, %v476_v47 }
 0x3cc   :  { %631 = shalt.err (!%p628_p6)
}
 0x3cd   :  { %s632_s17 = scalar_lea.hbm %s744_s3, 256 }
 0x3ce   :  { %p633_p7 = scmp.ne.s32.totalorder %s744_s3, %s632_s17  ;;  %p636_p8 = scmp.lt.u32.totalorder %s632_s17, %s744_s3 }
 0x3d0   :  { %p638_p9 = pnand %p636_p8, %p633_p7 }
 0x3d2   :  { %641 = shalt.err (!%p638_p9)
}
 0x3d3   :  { %490 = dma.vmem_to_hbm [thread:$0]  %s485_s13, 256, %s744_s3, [#allocation4], %s649_s22, %s649_s22, %s650_s23  }
 0x3d4   :  { %646 = dma.done.wait [#allocation4], 256  }
 0x3d5   :  { %647 = vsyncadd [#allocation4], 4294967040 }
 0x3d6   :  { %494 = vsyncpa [#allocation3], 1 }
 0x3d7   :  { %495 = vsyncpa [#allocation6], 1 }
 0x3d8   :  { %496 = vsyncpa [#allocation4], 1 }

</bundles_post_ra>
